<compile_context>
chip_gen: v7x
topology: tpu7x:2x2x1
jax: 0.10.0
libtpu: 0.0.40
codegen_flags: <defaults>
</compile_context>

<pallas_src>
import math
import functools

import jax
import jax.numpy as jnp
from jax import lax
from jax.experimental import pallas as pl
from jax.experimental.pallas import tpu as pltpu


def _rnn_kernel(x_ref, noise_ref, init_ref, w_in_ref, w_rec_ref, b_ref,
                out_ref, state_ref, *,
                alpha, sigma_scaled, time_chunk, matmul_dtype, unroll):
    """One grid step = `time_chunk` timesteps of the recurrence.

    x_ref     : (TC, B, I)  raw inputs for this chunk
    noise_ref : (TC, B, H)  pre-sampled N(0,1) noise for this chunk
    init_ref  : (B, H)      initial hidden state (used only at chunk 0)
    w_in_ref  : (I, H)      alpha * W_ih   (maybe bf16)
    w_rec_ref : (H, H)      alpha * W_hh   (maybe bf16)
    b_ref     : (1, H)      alpha * b_h    (f32)
    out_ref   : (TC, B, H)  out row t = state BEFORE applying timestep t of this chunk
                            (so row 0 of chunk 0 is the initial state)
    state_ref : (B, H) f32  VMEM scratch carrying the state across grid steps
    """
    @pl.when(pl.program_id(0) == 0)
    def _():
        state_ref[...] = init_ref[...]

    w_rec = w_rec_ref[...]              # resident across the whole chunk
    w_in = w_in_ref[...]
    bias = b_ref[...]
    one_minus_alpha = 1.0 - float(alpha)

    def step(t, state):
        # Write the carried state first: output row t = state after (chunk_start + t)
        # total timesteps. This store is off the serial chain.
        out_ref[t] = state.astype(out_ref.dtype)

        # Drive term: independent of the carried state, overlaps with the recurrence.
        drive = (jnp.dot(x_ref[t].astype(matmul_dtype), w_in,
                         preferred_element_type=jnp.float32)
                 + bias + sigma_scaled * noise_ref[t])

        # Serial chain: relu -> MXU matmul (alpha pre-folded into w_rec) -> fma.
        act = jnp.maximum(state, 0.0).astype(matmul_dtype)
        rec = jnp.dot(act, w_rec, preferred_element_type=jnp.float32)
        return one_minus_alpha * state + rec + drive

    # Partial unroll keeps LLO scheduler visibility (overlap of neighbouring steps'
    # drive loads / output stores with MXU latency) without excessive code size.
    state_ref[...] = lax.fori_loop(0, time_chunk, step, state_ref[...], unroll=unroll)


def rnn_forward(inputs, initial_state, noise, w_ih, w_hh, b_h, *,
                alpha, sigma_rec, time_chunk=32, unroll=8, use_bf16_matmul=False):
    """inputs: (T, B, I), initial_state: (B, H), noise: (T, B, H) ~ N(0,1).

    Returns (T+1, B, H): [initial_state, state_1, ..., state_T].
    """
    T, B, I = inputs.shape
    H = initial_state.shape[-1]
    alpha = float(alpha)
    sigma_rec = float(sigma_rec)

    T_out = T + 1                                   # output rows include the initial state
    tc = max(1, min(int(time_chunk), T_out))
    num_chunks = pl.cdiv(T_out, tc)                 # grid sized for the OUTPUT rows
    # x / noise have only T rows: clamp their block index so the DMA window stays in
    # bounds when the final (pure-carry) output chunk starts at row T.
    last_in_block = max(pl.cdiv(T, tc) - 1, 0)
    unroll_eff = max(1, min(int(unroll), tc))

    matmul_dtype = jnp.bfloat16 if use_bf16_matmul else jnp.float32
    # alpha folded into weights / bias / noise scale (both paths).
    w_rec = (alpha * w_hh).astype(matmul_dtype)
    w_in = (alpha * w_ih).astype(matmul_dtype)
    b = (alpha * b_h).astype(jnp.float32)
    sigma_scaled = alpha * sigma_rec

    kernel = functools.partial(
        _rnn_kernel, alpha=alpha, sigma_scaled=sigma_scaled, time_chunk=tc,
        matmul_dtype=matmul_dtype, unroll=unroll_eff)

    def in_time_map(c):
        return (jnp.minimum(c, last_in_block), 0, 0)

    out = pl.pallas_call(
        kernel,
        out_shape=jax.ShapeDtypeStruct((T_out, B, H), jnp.float32),
        grid_spec=pltpu.PrefetchScalarGridSpec(
            num_scalar_prefetch=0,
            grid=(num_chunks,),
            in_specs=[
                pl.BlockSpec((tc, B, I), in_time_map),        # raw inputs x
                pl.BlockSpec((tc, B, H), in_time_map),        # pre-sampled noise
                pl.BlockSpec((B, H), lambda c: (0, 0)),       # initial state (resident)
                pl.BlockSpec((I, H), lambda c: (0, 0)),       # alpha * W_ih (resident)
                pl.BlockSpec((H, H), lambda c: (0, 0)),       # alpha * W_hh (resident)
                pl.BlockSpec((1, H), lambda c: (0, 0)),       # alpha * b_h
            ],
            out_specs=pl.BlockSpec((tc, B, H), lambda c: (c, 0, 0)),
            scratch_shapes=[pltpu.VMEM((B, H), jnp.float32)],  # carried hidden state
        ),
        compiler_params=pltpu.CompilerParams(
            dimension_semantics=("arbitrary",),   # sequential recurrence over time chunks
        ),
    )(inputs, noise, initial_state, w_in, w_rec, b)
    return out


def _reference(inputs, initial_state, noise, w_ih, w_hh, b_h, *, alpha, sigma_rec):
    """Pure-JAX reference mirroring the PyTorch forward loop."""
    def step(state, xs):
        x_t, n_t = xs
        state_new = (jnp.maximum(state, 0.0) @ w_hh + b_h
                     + x_t @ w_ih + n_t * sigma_rec)
        state = (1.0 - alpha) * state + alpha * state_new
        return state, state

    _, states = jax.lax.scan(step, initial_state, (inputs, noise))
    return jnp.concatenate([initial_state[None], states], axis=0)


if __name__ == "__main__":
    # hp-like config (rule_trains = 'ctx_decision_making' -> n_input = 4)
    n_input, n_hidden, n_output = 4, 128, 2
    alpha = 0.2
    sigma_rec_hp = 0.05
    initial_std = 0.3
    sigma_rec = math.sqrt(2.0 / alpha) * sigma_rec_hp

    key = jax.random.PRNGKey(0)
    (k_ih, k_hh, k_out, k_x, k_h0, k_noise,
     k_x2, k_n2, k_x3, k_n3) = jax.random.split(key, 10)

    # Deterministic parameter init matching the module's shapes / distributions.
    weight_ih = jax.random.uniform(k_ih, (n_input, n_hidden), jnp.float32,
                                   minval=-1.0 / math.sqrt(2.0),
                                   maxval=1.0 / math.sqrt(2.0))
    non_diag = jax.random.normal(k_hh, (n_hidden, n_hidden), jnp.float32) * (
        initial_std / math.sqrt(n_hidden))
    eye = jnp.eye(n_hidden, dtype=jnp.float32)
    weight_hh = eye * 0.999 + (1.0 - eye) * non_diag
    b_h = jnp.zeros((1, n_hidden), jnp.float32)
    weight_out = jax.random.normal(k_out, (n_hidden, n_output), jnp.float32) * (
        0.4 / math.sqrt(n_hidden))  # parity with the module; unused in forward
    b_out = jnp.zeros((n_output,), jnp.float32)

    B = 8

    # ---- Test 1: T=8, time_chunk=8 (T % tc == 0 -> clamped input block + masked
    #              boundary output block), f32 path, tight tolerance.
    T1 = 8
    inputs1 = jax.random.normal(k_x, (T1, B, n_input), jnp.float32)
    initial_state = jax.random.normal(k_h0, (B, n_hidden), jnp.float32)
    noise1 = jax.random.normal(k_noise, (T1, B, n_hidden), jnp.float32)

    out1 = rnn_forward(inputs1, initial_state, noise1, weight_ih, weight_hh, b_h,
                       alpha=alpha, sigma_rec=sigma_rec, time_chunk=8)
    out1 = jax.block_until_ready(out1)
    ref1 = jax.block_until_ready(
        _reference(inputs1, initial_state, noise1, weight_ih, weight_hh, b_h,
                   alpha=alpha, sigma_rec=sigma_rec))
    assert out1.shape == (T1 + 1, B, n_hidden)
    assert jnp.allclose(out1, ref1, atol=1e-4, rtol=1e-4)

    # ---- Test 2: T=30, default time_chunk=32 (single chunk, boundary input read), f32.
    T2 = 30
    inputs2 = jax.random.normal(k_x2, (T2, B, n_input), jnp.float32)
    noise2 = jax.random.normal(k_n2, (T2, B, n_hidden), jnp.float32)
    out2 = rnn_forward(inputs2, initial_state, noise2, weight_ih, weight_hh, b_h,
                       alpha=alpha, sigma_rec=sigma_rec)
    out2 = jax.block_until_ready(out2)
    ref2 = jax.block_until_ready(
        _reference(inputs2, initial_state, noise2, weight_ih, weight_hh, b_h,
                   alpha=alpha, sigma_rec=sigma_rec))
    assert out2.shape == (T2 + 1, B, n_hidden)
    assert jnp.allclose(out2, ref2, atol=5e-4, rtol=5e-4)

    # ---- Test 3: T=32, time_chunk=8 (multiple chunks + final pure-carry chunk), f32.
    T3 = 32
    inputs3 = jax.random.normal(k_x3, (T3, B, n_input), jnp.float32)
    noise3 = jax.random.normal(k_n3, (T3, B, n_hidden), jnp.float32)
    out3 = rnn_forward(inputs3, initial_state, noise3, weight_ih, weight_hh, b_h,
                       alpha=alpha, sigma_rec=sigma_rec, time_chunk=8)
    out3 = jax.block_until_ready(out3)
    ref3 = jax.block_until_ready(
        _reference(inputs3, initial_state, noise3, weight_ih, weight_hh, b_h,
                   alpha=alpha, sigma_rec=sigma_rec))
    assert out3.shape == (T3 + 1, B, n_hidden)
    assert jnp.allclose(out3, ref3, atol=5e-4, rtol=5e-4)

    # ---- Test 4: bf16 MXU-operand path (all generations), loose check at short T.
    #      Note: bf16 re-quantization inside a recurrence compounds with T; validate
    #      at production sequence lengths before defaulting to it.
    out_bf16 = rnn_forward(inputs1, initial_state, noise1, weight_ih, weight_hh, b_h,
                           alpha=alpha, sigma_rec=sigma_rec, time_chunk=8,
                           use_bf16_matmul=True)
    out_bf16 = jax.block_until_ready(out_bf16)
    assert out_bf16.shape == (T1 + 1, B, n_hidden)
    assert jnp.allclose(out_bf16, ref1, atol=1e-1, rtol=1e-1)

    print("KERNEL_OK")
</pallas_src>

<mosaic_0001>
module attributes {stable_mosaic.version = 11 : i64} {
  func.func @_rnn_kernel(%arg0: i32, %arg1: memref<8x8x4xf32, #tpu.memory_space<vmem>>, %arg2: memref<8x8x128xf32, #tpu.memory_space<vmem>>, %arg3: memref<8x128xf32, #tpu.memory_space<vmem>>, %arg4: memref<4x128xf32, #tpu.memory_space<vmem>>, %arg5: memref<128x128xf32, #tpu.memory_space<vmem>>, %arg6: memref<1x128xf32, #tpu.memory_space<vmem>>, %arg7: memref<8x8x128xf32, #tpu.memory_space<vmem>>, %arg8: memref<8x128xf32, #tpu.memory_space<vmem>>) attributes {dimension_semantics = [#tpu.dimension_semantics<arbitrary>], iteration_bounds = array<i64: 2>, scalar_prefetch = 0 : i64, scratch_operands = 1 : i64, tpu.core_type = #tpu.core_type<tc>, window_params = [{transform_indices = @transform_0, window_bounds = array<i64: 8, 8, 4>}, {transform_indices = @transform_1, window_bounds = array<i64: 8, 8, 128>}, {pipeline_mode = #tpu.pipeline_mode<synchronous>, transform_indices = @transform_2, window_bounds = array<i64: 8, 128>}, {pipeline_mode = #tpu.pipeline_mode<synchronous>, transform_indices = @transform_3, window_bounds = array<i64: 4, 128>}, {pipeline_mode = #tpu.pipeline_mode<synchronous>, transform_indices = @transform_4, window_bounds = array<i64: 128, 128>}, {pipeline_mode = #tpu.pipeline_mode<synchronous>, transform_indices = @transform_5, window_bounds = array<i64: 1, 128>}, {transform_indices = @transform_6, window_bounds = array<i64: 8, 8, 128>}]} {
    %c0_i32 = arith.constant 0 : i32
    %0 = arith.cmpi eq, %arg0, %c0_i32 : i32
    %1 = arith.extui %0 : i1 to i32
    %c0_i32_0 = arith.constant 0 : i32
    %2 = arith.cmpi ne, %1, %c0_i32_0 : i32
    scf.if %2 {
      %c0_98 = arith.constant 0 : index
      %c0_99 = arith.constant 0 : index
      %192 = vector.load %arg3[%c0_98, %c0_99] : memref<8x128xf32, #tpu.memory_space<vmem>>, vector<8x128xf32>
      %c0_100 = arith.constant 0 : index
      %c0_101 = arith.constant 0 : index
      %193 = vector.load %arg8[%c0_100, %c0_101] : memref<8x128xf32, #tpu.memory_space<vmem>>, vector<8x128xf32>
      tpu.vector_store %arg8[%c0_100, %c0_101], %192 {strides = array<i32>} : memref<8x128xf32, #tpu.memory_space<vmem>>, vector<8x128xf32>,
    } else {
    }
    %c0 = arith.constant 0 : index
    %c0_1 = arith.constant 0 : index
    %3 = vector.load %arg5[%c0, %c0_1] : memref<128x128xf32, #tpu.memory_space<vmem>>, vector<128x128xf32>
    %c0_2 = arith.constant 0 : index
    %c0_3 = arith.constant 0 : index
    %4 = vector.load %arg4[%c0_2, %c0_3] : memref<4x128xf32, #tpu.memory_space<vmem>>, vector<4x128xf32>
    %c0_4 = arith.constant 0 : index
    %c0_5 = arith.constant 0 : index
    %5 = vector.load %arg6[%c0_4, %c0_5] : memref<1x128xf32, #tpu.memory_space<vmem>>, vector<1x128xf32>
    %c0_6 = arith.constant 0 : index
    %c0_7 = arith.constant 0 : index
    %6 = vector.load %arg8[%c0_6, %c0_7] : memref<8x128xf32, #tpu.memory_space<vmem>>, vector<8x128xf32>
    %c0_i32_8 = arith.constant 0 : i32
    %7 = arith.index_cast %c0_i32_8 : i32 to index
    %c0_9 = arith.constant 0 : index
    %c0_10 = arith.constant 0 : index
    %8 = vector.load %arg7[%7, %c0_9, %c0_10] : memref<8x8x128xf32, #tpu.memory_space<vmem>>, vector<1x8x128xf32>
    %9 = vector.shape_cast %8 : vector<1x8x128xf32> to vector<8x128xf32>
    %10 = vector.shape_cast %6 : vector<8x128xf32> to vector<1x8x128xf32>
    tpu.vector_store %arg7[%7, %c0_9, %c0_10], %10 {strides = array<i32>} : memref<8x8x128xf32, #tpu.memory_space<vmem>>, vector<1x8x128xf32>,
    %11 = arith.index_cast %c0_i32_8 : i32 to index
    %c0_11 = arith.constant 0 : index
    %c0_12 = arith.constant 0 : index
    %12 = vector.load %arg1[%11, %c0_11, %c0_12] : memref<8x8x4xf32, #tpu.memory_space<vmem>>, vector<1x8x4xf32>
    %13 = vector.shape_cast %12 : vector<1x8x4xf32> to vector<8x4xf32>
    %cst = arith.constant dense<0.000000e+00> : vector<8x128xf32>
    %14 = tpu.matmul %13, %4, %cst {dimension_numbers = #tpu.dot_dimension_numbers<[1], [0], [0], [1], [0, 0, 1, 1], [], []>} : vector<8x4xf32>, vector<4x128xf32>, vector<8x128xf32> -> vector<8x128xf32>
    %15 = vector.broadcast %5 : vector<1x128xf32> to vector<8x128xf32>
    %16 = arith.addf %14, %15 : vector<8x128xf32>
    %17 = arith.index_cast %c0_i32_8 : i32 to index
    %c0_13 = arith.constant 0 : index
    %c0_14 = arith.constant 0 : index
    %18 = vector.load %arg2[%17, %c0_13, %c0_14] : memref<8x8x128xf32, #tpu.memory_space<vmem>>, vector<1x8x128xf32>
    %19 = vector.shape_cast %18 : vector<1x8x128xf32> to vector<8x128xf32>
    %cst_15 = arith.constant 0.0316227749 : f32
    %20 = vector.broadcast %cst_15 : f32 to vector<8x128xf32>
    %21 = arith.mulf %20, %19 : vector<8x128xf32>
    %22 = arith.addf %16, %21 : vector<8x128xf32>
    %cst_16 = arith.constant 0.000000e+00 : f32
    %23 = vector.broadcast %cst_16 : f32 to vector<8x128xf32>
    %24 = arith.maximumf %6, %23 : vector<8x128xf32>
    %cst_17 = arith.constant dense<0.000000e+00> : vector<8x128xf32>
    %25 = tpu.matmul %24, %3, %cst_17 {dimension_numbers = #tpu.dot_dimension_numbers<[1], [0], [0], [1], [0, 0, 1, 1], [], []>} : vector<8x128xf32>, vector<128x128xf32>, vector<8x128xf32> -> vector<8x128xf32>
    %cst_18 = arith.constant 8.000000e-01 : f32
    %26 = vector.broadcast %cst_18 : f32 to vector<8x128xf32>
    %27 = arith.mulf %26, %6 : vector<8x128xf32>
    %28 = arith.addf %27, %25 : vector<8x128xf32>
    %29 = arith.addf %28, %22 : vector<8x128xf32>
    %c1_i32 = arith.constant 1 : i32
    %30 = arith.index_cast %c1_i32 : i32 to index
    %c0_19 = arith.constant 0 : index
    %c0_20 = arith.constant 0 : index
    %31 = vector.load %arg7[%30, %c0_19, %c0_20] : memref<8x8x128xf32, #tpu.memory_space<vmem>>, vector<1x8x128xf32>
    %32 = vector.shape_cast %31 : vector<1x8x128xf32> to vector<8x128xf32>
    %33 = vector.shape_cast %29 : vector<8x128xf32> to vector<1x8x128xf32>
    tpu.vector_store %arg7[%30, %c0_19, %c0_20], %33 {strides = array<i32>} : memref<8x8x128xf32, #tpu.memory_space<vmem>>, vector<1x8x128xf32>,
    %34 = arith.index_cast %c1_i32 : i32 to index
    %c0_21 = arith.constant 0 : index
    %c0_22 = arith.constant 0 : index
    %35 = vector.load %arg1[%34, %c0_21, %c0_22] : memref<8x8x4xf32, #tpu.memory_space<vmem>>, vector<1x8x4xf32>
    %36 = vector.shape_cast %35 : vector<1x8x4xf32> to vector<8x4xf32>
    %cst_23 = arith.constant dense<0.000000e+00> : vector<8x128xf32>
    %37 = tpu.matmul %36, %4, %cst_23 {dimension_numbers = #tpu.dot_dimension_numbers<[1], [0], [0], [1], [0, 0, 1, 1], [], []>} : vector<8x4xf32>, vector<4x128xf32>, vector<8x128xf32> -> vector<8x128xf32>
    %38 = vector.broadcast %5 : vector<1x128xf32> to vector<8x128xf32>
    %39 = arith.addf %37, %38 : vector<8x128xf32>
    %40 = arith.index_cast %c1_i32 : i32 to index
    %c0_24 = arith.constant 0 : index
    %c0_25 = arith.constant 0 : index
    %41 = vector.load %arg2[%40, %c0_24, %c0_25] : memref<8x8x128xf32, #tpu.memory_space<vmem>>, vector<1x8x128xf32>
    %42 = vector.shape_cast %41 : vector<1x8x128xf32> to vector<8x128xf32>
    %cst_26 = arith.constant 0.0316227749 : f32
    %43 = vector.broadcast %cst_26 : f32 to vector<8x128xf32>
    %44 = arith.mulf %43, %42 : vector<8x128xf32>
    %45 = arith.addf %39, %44 : vector<8x128xf32>
    %cst_27 = arith.constant 0.000000e+00 : f32
    %46 = vector.broadcast %cst_27 : f32 to vector<8x128xf32>
    %47 = arith.maximumf %29, %46 : vector<8x128xf32>
    %cst_28 = arith.constant dense<0.000000e+00> : vector<8x128xf32>
    %48 = tpu.matmul %47, %3, %cst_28 {dimension_numbers = #tpu.dot_dimension_numbers<[1], [0], [0], [1], [0, 0, 1, 1], [], []>} : vector<8x128xf32>, vector<128x128xf32>, vector<8x128xf32> -> vector<8x128xf32>
    %cst_29 = arith.constant 8.000000e-01 : f32
    %49 = vector.broadcast %cst_29 : f32 to vector<8x128xf32>
    %50 = arith.mulf %49, %29 : vector<8x128xf32>
    %51 = arith.addf %50, %48 : vector<8x128xf32>
    %52 = arith.addf %51, %45 : vector<8x128xf32>
    %c2_i32 = arith.constant 2 : i32
    %53 = arith.index_cast %c2_i32 : i32 to index
    %c0_30 = arith.constant 0 : index
    %c0_31 = arith.constant 0 : index
    %54 = vector.load %arg7[%53, %c0_30, %c0_31] : memref<8x8x128xf32, #tpu.memory_space<vmem>>, vector<1x8x128xf32>
    %55 = vector.shape_cast %54 : vector<1x8x128xf32> to vector<8x128xf32>
    %56 = vector.shape_cast %52 : vector<8x128xf32> to vector<1x8x128xf32>
    tpu.vector_store %arg7[%53, %c0_30, %c0_31], %56 {strides = array<i32>} : memref<8x8x128xf32, #tpu.memory_space<vmem>>, vector<1x8x128xf32>,
    %57 = arith.index_cast %c2_i32 : i32 to index
    %c0_32 = arith.constant 0 : index
    %c0_33 = arith.constant 0 : index
    %58 = vector.load %arg1[%57, %c0_32, %c0_33] : memref<8x8x4xf32, #tpu.memory_space<vmem>>, vector<1x8x4xf32>
    %59 = vector.shape_cast %58 : vector<1x8x4xf32> to vector<8x4xf32>
    %cst_34 = arith.constant dense<0.000000e+00> : vector<8x128xf32>
    %60 = tpu.matmul %59, %4, %cst_34 {dimension_numbers = #tpu.dot_dimension_numbers<[1], [0], [0], [1], [0, 0, 1, 1], [], []>} : vector<8x4xf32>, vector<4x128xf32>, vector<8x128xf32> -> vector<8x128xf32>
    %61 = vector.broadcast %5 : vector<1x128xf32> to vector<8x128xf32>
    %62 = arith.addf %60, %61 : vector<8x128xf32>
    %63 = arith.index_cast %c2_i32 : i32 to index
    %c0_35 = arith.constant 0 : index
    %c0_36 = arith.constant 0 : index
    %64 = vector.load %arg2[%63, %c0_35, %c0_36] : memref<8x8x128xf32, #tpu.memory_space<vmem>>, vector<1x8x128xf32>
    %65 = vector.shape_cast %64 : vector<1x8x128xf32> to vector<8x128xf32>
    %cst_37 = arith.constant 0.0316227749 : f32
    %66 = vector.broadcast %cst_37 : f32 to vector<8x128xf32>
    %67 = arith.mulf %66, %65 : vector<8x128xf32>
    %68 = arith.addf %62, %67 : vector<8x128xf32>
    %cst_38 = arith.constant 0.000000e+00 : f32
    %69 = vector.broadcast %cst_38 : f32 to vector<8x128xf32>
    %70 = arith.maximumf %52, %69 : vector<8x128xf32>
    %cst_39 = arith.constant dense<0.000000e+00> : vector<8x128xf32>
    %71 = tpu.matmul %70, %3, %cst_39 {dimension_numbers = #tpu.dot_dimension_numbers<[1], [0], [0], [1], [0, 0, 1, 1], [], []>} : vector<8x128xf32>, vector<128x128xf32>, vector<8x128xf32> -> vector<8x128xf32>
    %cst_40 = arith.constant 8.000000e-01 : f32
    %72 = vector.broadcast %cst_40 : f32 to vector<8x128xf32>
    %73 = arith.mulf %72, %52 : vector<8x128xf32>
    %74 = arith.addf %73, %71 : vector<8x128xf32>
    %75 = arith.addf %74, %68 : vector<8x128xf32>
    %c3_i32 = arith.constant 3 : i32
    %76 = arith.index_cast %c3_i32 : i32 to index
    %c0_41 = arith.constant 0 : index
    %c0_42 = arith.constant 0 : index
    %77 = vector.load %arg7[%76, %c0_41, %c0_42] : memref<8x8x128xf32, #tpu.memory_space<vmem>>, vector<1x8x128xf32>
    %78 = vector.shape_cast %77 : vector<1x8x128xf32> to vector<8x128xf32>
    %79 = vector.shape_cast %75 : vector<8x128xf32> to vector<1x8x128xf32>
    tpu.vector_store %arg7[%76, %c0_41, %c0_42], %79 {strides = array<i32>} : memref<8x8x128xf32, #tpu.memory_space<vmem>>, vector<1x8x128xf32>,
    %80 = arith.index_cast %c3_i32 : i32 to index
    %c0_43 = arith.constant 0 : index
    %c0_44 = arith.constant 0 : index
    %81 = vector.load %arg1[%80, %c0_43, %c0_44] : memref<8x8x4xf32, #tpu.memory_space<vmem>>, vector<1x8x4xf32>
    %82 = vector.shape_cast %81 : vector<1x8x4xf32> to vector<8x4xf32>
    %cst_45 = arith.constant dense<0.000000e+00> : vector<8x128xf32>
    %83 = tpu.matmul %82, %4, %cst_45 {dimension_numbers = #tpu.dot_dimension_numbers<[1], [0], [0], [1], [0, 0, 1, 1], [], []>} : vector<8x4xf32>, vector<4x128xf32>, vector<8x128xf32> -> vector<8x128xf32>
    %84 = vector.broadcast %5 : vector<1x128xf32> to vector<8x128xf32>
    %85 = arith.addf %83, %84 : vector<8x128xf32>
    %86 = arith.index_cast %c3_i32 : i32 to index
    %c0_46 = arith.constant 0 : index
    %c0_47 = arith.constant 0 : index
    %87 = vector.load %arg2[%86, %c0_46, %c0_47] : memref<8x8x128xf32, #tpu.memory_space<vmem>>, vector<1x8x128xf32>
    %88 = vector.shape_cast %87 : vector<1x8x128xf32> to vector<8x128xf32>
    %cst_48 = arith.constant 0.0316227749 : f32
    %89 = vector.broadcast %cst_48 : f32 to vector<8x128xf32>
    %90 = arith.mulf %89, %88 : vector<8x128xf32>
    %91 = arith.addf %85, %90 : vector<8x128xf32>
    %cst_49 = arith.constant 0.000000e+00 : f32
    %92 = vector.broadcast %cst_49 : f32 to vector<8x128xf32>
    %93 = arith.maximumf %75, %92 : vector<8x128xf32>
    %cst_50 = arith.constant dense<0.000000e+00> : vector<8x128xf32>
    %94 = tpu.matmul %93, %3, %cst_50 {dimension_numbers = #tpu.dot_dimension_numbers<[1], [0], [0], [1], [0, 0, 1, 1], [], []>} : vector<8x128xf32>, vector<128x128xf32>, vector<8x128xf32> -> vector<8x128xf32>
    %cst_51 = arith.constant 8.000000e-01 : f32
    %95 = vector.broadcast %cst_51 : f32 to vector<8x128xf32>
    %96 = arith.mulf %95, %75 : vector<8x128xf32>
    %97 = arith.addf %96, %94 : vector<8x128xf32>
    %98 = arith.addf %97, %91 : vector<8x128xf32>
    %c4_i32 = arith.constant 4 : i32
    %99 = arith.index_cast %c4_i32 : i32 to index
    %c0_52 = arith.constant 0 : index
    %c0_53 = arith.constant 0 : index
    %100 = vector.load %arg7[%99, %c0_52, %c0_53] : memref<8x8x128xf32, #tpu.memory_space<vmem>>, vector<1x8x128xf32>
    %101 = vector.shape_cast %100 : vector<1x8x128xf32> to vector<8x128xf32>
    %102 = vector.shape_cast %98 : vector<8x128xf32> to vector<1x8x128xf32>
    tpu.vector_store %arg7[%99, %c0_52, %c0_53], %102 {strides = array<i32>} : memref<8x8x128xf32, #tpu.memory_space<vmem>>, vector<1x8x128xf32>,
    %103 = arith.index_cast %c4_i32 : i32 to index
    %c0_54 = arith.constant 0 : index
    %c0_55 = arith.constant 0 : index
    %104 = vector.load %arg1[%103, %c0_54, %c0_55] : memref<8x8x4xf32, #tpu.memory_space<vmem>>, vector<1x8x4xf32>
    %105 = vector.shape_cast %104 : vector<1x8x4xf32> to vector<8x4xf32>
    %cst_56 = arith.constant dense<0.000000e+00> : vector<8x128xf32>
    %106 = tpu.matmul %105, %4, %cst_56 {dimension_numbers = #tpu.dot_dimension_numbers<[1], [0], [0], [1], [0, 0, 1, 1], [], []>} : vector<8x4xf32>, vector<4x128xf32>, vector<8x128xf32> -> vector<8x128xf32>
    %107 = vector.broadcast %5 : vector<1x128xf32> to vector<8x128xf32>
    %108 = arith.addf %106, %107 : vector<8x128xf32>
    %109 = arith.index_cast %c4_i32 : i32 to index
    %c0_57 = arith.constant 0 : index
    %c0_58 = arith.constant 0 : index
    %110 = vector.load %arg2[%109, %c0_57, %c0_58] : memref<8x8x128xf32, #tpu.memory_space<vmem>>, vector<1x8x128xf32>
    %111 = vector.shape_cast %110 : vector<1x8x128xf32> to vector<8x128xf32>
    %cst_59 = arith.constant 0.0316227749 : f32
    %112 = vector.broadcast %cst_59 : f32 to vector<8x128xf32>
    %113 = arith.mulf %112, %111 : vector<8x128xf32>
    %114 = arith.addf %108, %113 : vector<8x128xf32>
    %cst_60 = arith.constant 0.000000e+00 : f32
    %115 = vector.broadcast %cst_60 : f32 to vector<8x128xf32>
    %116 = arith.maximumf %98, %115 : vector<8x128xf32>
    %cst_61 = arith.constant dense<0.000000e+00> : vector<8x128xf32>
    %117 = tpu.matmul %116, %3, %cst_61 {dimension_numbers = #tpu.dot_dimension_numbers<[1], [0], [0], [1], [0, 0, 1, 1], [], []>} : vector<8x128xf32>, vector<128x128xf32>, vector<8x128xf32> -> vector<8x128xf32>
    %cst_62 = arith.constant 8.000000e-01 : f32
    %118 = vector.broadcast %cst_62 : f32 to vector<8x128xf32>
    %119 = arith.mulf %118, %98 : vector<8x128xf32>
    %120 = arith.addf %119, %117 : vector<8x128xf32>
    %121 = arith.addf %120, %114 : vector<8x128xf32>
    %c5_i32 = arith.constant 5 : i32
    %122 = arith.index_cast %c5_i32 : i32 to index
    %c0_63 = arith.constant 0 : index
    %c0_64 = arith.constant 0 : index
    %123 = vector.load %arg7[%122, %c0_63, %c0_64] : memref<8x8x128xf32, #tpu.memory_space<vmem>>, vector<1x8x128xf32>
    %124 = vector.shape_cast %123 : vector<1x8x128xf32> to vector<8x128xf32>
    %125 = vector.shape_cast %121 : vector<8x128xf32> to vector<1x8x128xf32>
    tpu.vector_store %arg7[%122, %c0_63, %c0_64], %125 {strides = array<i32>} : memref<8x8x128xf32, #tpu.memory_space<vmem>>, vector<1x8x128xf32>,
    %126 = arith.index_cast %c5_i32 : i32 to index
    %c0_65 = arith.constant 0 : index
    %c0_66 = arith.constant 0 : index
    %127 = vector.load %arg1[%126, %c0_65, %c0_66] : memref<8x8x4xf32, #tpu.memory_space<vmem>>, vector<1x8x4xf32>
    %128 = vector.shape_cast %127 : vector<1x8x4xf32> to vector<8x4xf32>
    %cst_67 = arith.constant dense<0.000000e+00> : vector<8x128xf32>
    %129 = tpu.matmul %128, %4, %cst_67 {dimension_numbers = #tpu.dot_dimension_numbers<[1], [0], [0], [1], [0, 0, 1, 1], [], []>} : vector<8x4xf32>, vector<4x128xf32>, vector<8x128xf32> -> vector<8x128xf32>
    %130 = vector.broadcast %5 : vector<1x128xf32> to vector<8x128xf32>
    %131 = arith.addf %129, %130 : vector<8x128xf32>
    %132 = arith.index_cast %c5_i32 : i32 to index
    %c0_68 = arith.constant 0 : index
    %c0_69 = arith.constant 0 : index
    %133 = vector.load %arg2[%132, %c0_68, %c0_69] : memref<8x8x128xf32, #tpu.memory_space<vmem>>, vector<1x8x128xf32>
    %134 = vector.shape_cast %133 : vector<1x8x128xf32> to vector<8x128xf32>
    %cst_70 = arith.constant 0.0316227749 : f32
    %135 = vector.broadcast %cst_70 : f32 to vector<8x128xf32>
    %136 = arith.mulf %135, %134 : vector<8x128xf32>
    %137 = arith.addf %131, %136 : vector<8x128xf32>
    %cst_71 = arith.constant 0.000000e+00 : f32
    %138 = vector.broadcast %cst_71 : f32 to vector<8x128xf32>
    %139 = arith.maximumf %121, %138 : vector<8x128xf32>
    %cst_72 = arith.constant dense<0.000000e+00> : vector<8x128xf32>
    %140 = tpu.matmul %139, %3, %cst_72 {dimension_numbers = #tpu.dot_dimension_numbers<[1], [0], [0], [1], [0, 0, 1, 1], [], []>} : vector<8x128xf32>, vector<128x128xf32>, vector<8x128xf32> -> vector<8x128xf32>
    %cst_73 = arith.constant 8.000000e-01 : f32
    %141 = vector.broadcast %cst_73 : f32 to vector<8x128xf32>
    %142 = arith.mulf %141, %121 : vector<8x128xf32>
    %143 = arith.addf %142, %140 : vector<8x128xf32>
    %144 = arith.addf %143, %137 : vector<8x128xf32>
    %c6_i32 = arith.constant 6 : i32
    %145 = arith.index_cast %c6_i32 : i32 to index
    %c0_74 = arith.constant 0 : index
    %c0_75 = arith.constant 0 : index
    %146 = vector.load %arg7[%145, %c0_74, %c0_75] : memref<8x8x128xf32, #tpu.memory_space<vmem>>, vector<1x8x128xf32>
    %147 = vector.shape_cast %146 : vector<1x8x128xf32> to vector<8x128xf32>
    %148 = vector.shape_cast %144 : vector<8x128xf32> to vector<1x8x128xf32>
    tpu.vector_store %arg7[%145, %c0_74, %c0_75], %148 {strides = array<i32>} : memref<8x8x128xf32, #tpu.memory_space<vmem>>, vector<1x8x128xf32>,
    %149 = arith.index_cast %c6_i32 : i32 to index
    %c0_76 = arith.constant 0 : index
    %c0_77 = arith.constant 0 : index
    %150 = vector.load %arg1[%149, %c0_76, %c0_77] : memref<8x8x4xf32, #tpu.memory_space<vmem>>, vector<1x8x4xf32>
    %151 = vector.shape_cast %150 : vector<1x8x4xf32> to vector<8x4xf32>
    %cst_78 = arith.constant dense<0.000000e+00> : vector<8x128xf32>
    %152 = tpu.matmul %151, %4, %cst_78 {dimension_numbers = #tpu.dot_dimension_numbers<[1], [0], [0], [1], [0, 0, 1, 1], [], []>} : vector<8x4xf32>, vector<4x128xf32>, vector<8x128xf32> -> vector<8x128xf32>
    %153 = vector.broadcast %5 : vector<1x128xf32> to vector<8x128xf32>
    %154 = arith.addf %152, %153 : vector<8x128xf32>
    %155 = arith.index_cast %c6_i32 : i32 to index
    %c0_79 = arith.constant 0 : index
    %c0_80 = arith.constant 0 : index
    %156 = vector.load %arg2[%155, %c0_79, %c0_80] : memref<8x8x128xf32, #tpu.memory_space<vmem>>, vector<1x8x128xf32>
    %157 = vector.shape_cast %156 : vector<1x8x128xf32> to vector<8x128xf32>
    %cst_81 = arith.constant 0.0316227749 : f32
    %158 = vector.broadcast %cst_81 : f32 to vector<8x128xf32>
    %159 = arith.mulf %158, %157 : vector<8x128xf32>
    %160 = arith.addf %154, %159 : vector<8x128xf32>
    %cst_82 = arith.constant 0.000000e+00 : f32
    %161 = vector.broadcast %cst_82 : f32 to vector<8x128xf32>
    %162 = arith.maximumf %144, %161 : vector<8x128xf32>
    %cst_83 = arith.constant dense<0.000000e+00> : vector<8x128xf32>
    %163 = tpu.matmul %162, %3, %cst_83 {dimension_numbers = #tpu.dot_dimension_numbers<[1], [0], [0], [1], [0, 0, 1, 1], [], []>} : vector<8x128xf32>, vector<128x128xf32>, vector<8x128xf32> -> vector<8x128xf32>
    %cst_84 = arith.constant 8.000000e-01 : f32
    %164 = vector.broadcast %cst_84 : f32 to vector<8x128xf32>
    %165 = arith.mulf %164, %144 : vector<8x128xf32>
    %166 = arith.addf %165, %163 : vector<8x128xf32>
    %167 = arith.addf %166, %160 : vector<8x128xf32>
    %c7_i32 = arith.constant 7 : i32
    %168 = arith.index_cast %c7_i32 : i32 to index
    %c0_85 = arith.constant 0 : index
    %c0_86 = arith.constant 0 : index
    %169 = vector.load %arg7[%168, %c0_85, %c0_86] : memref<8x8x128xf32, #tpu.memory_space<vmem>>, vector<1x8x128xf32>
    %170 = vector.shape_cast %169 : vector<1x8x128xf32> to vector<8x128xf32>
    %171 = vector.shape_cast %167 : vector<8x128xf32> to vector<1x8x128xf32>
    tpu.vector_store %arg7[%168, %c0_85, %c0_86], %171 {strides = array<i32>} : memref<8x8x128xf32, #tpu.memory_space<vmem>>, vector<1x8x128xf32>,
    %172 = arith.index_cast %c7_i32 : i32 to index
    %c0_87 = arith.constant 0 : index
    %c0_88 = arith.constant 0 : index
    %173 = vector.load %arg1[%172, %c0_87, %c0_88] : memref<8x8x4xf32, #tpu.memory_space<vmem>>, vector<1x8x4xf32>
    %174 = vector.shape_cast %173 : vector<1x8x4xf32> to vector<8x4xf32>
    %cst_89 = arith.constant dense<0.000000e+00> : vector<8x128xf32>
    %175 = tpu.matmul %174, %4, %cst_89 {dimension_numbers = #tpu.dot_dimension_numbers<[1], [0], [0], [1], [0, 0, 1, 1], [], []>} : vector<8x4xf32>, vector<4x128xf32>, vector<8x128xf32> -> vector<8x128xf32>
    %176 = vector.broadcast %5 : vector<1x128xf32> to vector<8x128xf32>
    %177 = arith.addf %175, %176 : vector<8x128xf32>
    %178 = arith.index_cast %c7_i32 : i32 to index
    %c0_90 = arith.constant 0 : index
    %c0_91 = arith.constant 0 : index
    %179 = vector.load %arg2[%178, %c0_90, %c0_91] : memref<8x8x128xf32, #tpu.memory_space<vmem>>, vector<1x8x128xf32>
    %180 = vector.shape_cast %179 : vector<1x8x128xf32> to vector<8x128xf32>
    %cst_92 = arith.constant 0.0316227749 : f32
    %181 = vector.broadcast %cst_92 : f32 to vector<8x128xf32>
    %182 = arith.mulf %181, %180 : vector<8x128xf32>
    %183 = arith.addf %177, %182 : vector<8x128xf32>
    %cst_93 = arith.constant 0.000000e+00 : f32
    %184 = vector.broadcast %cst_93 : f32 to vector<8x128xf32>
    %185 = arith.maximumf %167, %184 : vector<8x128xf32>
    %cst_94 = arith.constant dense<0.000000e+00> : vector<8x128xf32>
    %186 = tpu.matmul %185, %3, %cst_94 {dimension_numbers = #tpu.dot_dimension_numbers<[1], [0], [0], [1], [0, 0, 1, 1], [], []>} : vector<8x128xf32>, vector<128x128xf32>, vector<8x128xf32> -> vector<8x128xf32>
    %cst_95 = arith.constant 8.000000e-01 : f32
    %187 = vector.broadcast %cst_95 : f32 to vector<8x128xf32>
    %188 = arith.mulf %187, %167 : vector<8x128xf32>
    %189 = arith.addf %188, %186 : vector<8x128xf32>
    %190 = arith.addf %189, %183 : vector<8x128xf32>
    %c8_i32 = arith.constant 8 : i32
    %c0_96 = arith.constant 0 : index
    %c0_97 = arith.constant 0 : index
    %191 = vector.load %arg8[%c0_96, %c0_97] : memref<8x128xf32, #tpu.memory_space<vmem>>, vector<8x128xf32>
    tpu.vector_store %arg8[%c0_96, %c0_97], %190 {strides = array<i32>} : memref<8x128xf32, #tpu.memory_space<vmem>>, vector<8x128xf32>,
    return
  }
  func.func @transform_0(%arg0: i32) -> (i32, i32, i32) {
    %c0_i32 = arith.constant 0 : i32
    %0 = arith.minsi %arg0, %c0_i32 : i32
    %c0_i32_0 = arith.constant 0 : i32
    %c0_i32_1 = arith.constant 0 : i32
    %c0_i32_2 = arith.constant 0 : i32
    return %0, %c0_i32_0, %c0_i32_1 : i32, i32, i32
  }
  func.func @transform_1(%arg0: i32) -> (i32, i32, i32) {
    %c0_i32 = arith.constant 0 : i32
    %0 = arith.minsi %arg0, %c0_i32 : i32
    %c0_i32_0 = arith.constant 0 : i32
    %c0_i32_1 = arith.constant 0 : i32
    %c0_i32_2 = arith.constant 0 : i32
    return %0, %c0_i32_0, %c0_i32_1 : i32, i32, i32
  }
  func.func @transform_2(%arg0: i32) -> (i32, i32) {
    %c0_i32 = arith.constant 0 : i32
    %c0_i32_0 = arith.constant 0 : i32
    %c0_i32_1 = arith.constant 0 : i32
    return %c0_i32, %c0_i32_0 : i32, i32
  }
  func.func @transform_3(%arg0: i32) -> (i32, i32) {
    %c0_i32 = arith.constant 0 : i32
    %c0_i32_0 = arith.constant 0 : i32
    %c0_i32_1 = arith.constant 0 : i32
    return %c0_i32, %c0_i32_0 : i32, i32
  }
  func.func @transform_4(%arg0: i32) -> (i32, i32) {
    %c0_i32 = arith.constant 0 : i32
    %c0_i32_0 = arith.constant 0 : i32
    %c0_i32_1 = arith.constant 0 : i32
    return %c0_i32, %c0_i32_0 : i32, i32
  }
  func.func @transform_5(%arg0: i32) -> (i32, i32) {
    %c0_i32 = arith.constant 0 : i32
    %c0_i32_0 = arith.constant 0 : i32
    %c0_i32_1 = arith.constant 0 : i32
    return %c0_i32, %c0_i32_0 : i32, i32
  }
  func.func @transform_6(%arg0: i32) -> (i32, i32, i32) {
    %c0_i32 = arith.constant 0 : i32
    %c0_i32_0 = arith.constant 0 : i32
    %c0_i32_1 = arith.constant 0 : i32
    return %arg0, %c0_i32, %c0_i32_0 : i32, i32, i32
  }
}

</mosaic_0001>

<bundles_post_ra>
// kernel: tpu_custom_call.1
= control target key start
LH: loop header
LB: loop body
LE: loop exit
PB: predicated region body
PF: predicated region fallthrough
CT: control target
= control target key end

     0   :  { %11 = vsyncpa [#allocation4], 0  ;;  %s3086_s0 = inlined_call_operand.vmem [shape: f32[8,8,4], index: 0, kind: input, shape index: {}]   ;;  %s3087_s1 = inlined_call_operand.vmem [shape: f32[8,8,128], index: 1, kind: input, shape index: {}]   ;;  %s3088_s2 = inlined_call_operand.vmem [shape: f32[8,128], index: 2, kind: input, shape index: {}]   ;;  %s3089_s3 = inlined_call_operand.vmem [shape: f32[4,128], index: 3, kind: input, shape index: {}]   ;;  %s3090_s4 = inlined_call_operand.hbm [shape: f32[128,128], index: 4, kind: input, shape index: {}]   ;;  %s3091_s5 = inlined_call_operand.vmem [shape: f32[1,128], index: 5, kind: input, shape index: {}]   ;;  %s3092_s6 = inlined_call_operand.hbm [shape: f32[9,8,128], index: 6, kind: output, shape index: {}]  }
   0x1   :  { %12 = vsyncpa [#allocation5], 0 }
   0x2   :  { %14 = vsyncpa [#allocation5 + $0x1], 0  ;;  %s2662_s21 = smov 0   ;;  %s2664_s22 = smov 0  }
   0x3   :  { %s2666_s23 = smov 0   ;;  %s2668_s24 = smov 0  }
   0x4 LB: > { %s2683_s25 = sadd.s32 4294967295, %s2616_s24   ;;  %s1702_s26 = sadd.s32 4294967294, %s2616_s24   ;;  %s2616_s24 = sphi %s2668_s24, %s3108_s24   ;;  %s2612_s23 = sphi %s2666_s23, %s3107_s23   ;;  %s2608_s22 = sphi %s2664_s22, %s3106_s22   ;;  %s2604_s21 = sphi %s2662_s21, %s3105_s21  }
   0x5   : > { %s2687_s27 = sadd.s32 1, %s2616_s24   ;;  %s171_s28 = sadd.s32 1, %s2612_s23 }
   0x6   : > { %s168_s29 = ssub.s32 %s2616_s24, %s2687_s27  ;;  %p181_p0 = scmp.ne.s32.totalorder %s2612_s23, %s2608_s22 }
   0x7   : > { %p169_p1 = scmp.eq.s32.totalorder %s168_s29, 0  ;;  %p182_p2 = scmp.eq.s32.totalorder %s2683_s25, 1 }
   0x8   : > { %p187_p3 = scmp.ne.s32.totalorder %s2608_s22, %s2604_s21  ;;  %p188_p4 = scmp.eq.s32.totalorder %s1702_s26, 1 }
   0x9   : > { %s2698_s30 = scalar_select %p169_p1, %s2612_s23, %s171_s28  }
   0xa   : > { %p2700_p5 = por %p182_p2, %p181_p0  ;;  %p2704_p6 = por %p188_p4, %p187_p3 }
   0xb   : > { %p1703_p7 = scmp.ge.s32.totalorder %s2616_s24, 1  ;;  %p195_p8 = scmp.lt.s32.totalorder %s2616_s24, 3 }
   0xc   : > { %s3095_s7 = scalar_select %p2700_p5, 1, 0 }
   0xd   : > { %s3096_s8 = scalar_select %p2704_p6, 1, 0 }
   0xe   : > { %p3093_p10 = scmp.eq.s32.totalorder %s2683_s25, 0  ;;  %p2712_p11 = pnand %p1703_p7, %p195_p8 }
   0xf   : > { %s2618_s10 = smov [#allocation3]   ;;  %s2522_s15 = scalar_lea.hbm %s3090_s4, 2048 }
  0x10   : > { %s3097_s9 = scalar_select %p2712_p11, 1, 0 }
  0x11   : > { %s213_s11 = sshll.u32 %s2618_s10, 4  ;;  %p2471_p12 = pneg %p2712_p11  ;;  %s214_s11 = int_to_ptr.vmem [resolvable:$true] %s213_s11 }
  0x12   : > { %p2523_p0 = scmp.ne.s32.totalorder %s3090_s4, %s2522_s15  ;;  %p2529_p4 = scmp.lt.u32.totalorder %s2522_s15, %s3090_s4 }
  0x13   : > { %p2720_p13 = pnand %p3093_p10, %p2471_p12 }
  0x15   : > { %p2524_p1 = pneg %p2720_p13 }
  0x17   : > { %p2525_p2 = pnand %p2524_p1, %p2523_p0 }
  0x19   : > { %p2526_p3 = pneg %p2525_p2 }
  0x1b   : > { %p2531_p7 = pnand %p2529_p4, %p2526_p3 }
  0x1d   : > { %2534 = shalt.err (!%p2531_p7)
}
  0x1e   : > { %s2535_s20 = scalar_lea.vmem %s214_s11, 2048  ;;  %p2543_p10 = scmp.lt.s32.totalorder %s214_s11, %s214_s11 }
  0x1f   : > { %p2536_p8 = scmp.ne.s32.totalorder %s214_s11, %s2535_s20  ;;  %p2544_p6 = scmp.lt.s32.totalorder %s2535_s20, %s2535_s20 }
  0x21   : > { %p2538_p12 = pnand %p2536_p8, %p2524_p1  ;;  %p2545_p5 = por %p2544_p6, %p2543_p10 }
  0x23   : > { %p2539_p9 = pneg %p2538_p12 }
  0x25   : > { %p2546_p11 = pnand %p2545_p5, %p2539_p9 }
  0x27   : > { %2549 = shalt.err (!%p2546_p11)
}
  0x28   : > { %s2619_s26 = smov 128   ;;  %s2620_s28 = smov 8  }
  0x29   : > { %2474 = dma.hbm_to_vmem [thread:$0]  (!%p2720_p13), %s3090_s4, 2048, %s214_s11, [#allocation4], %s2619_s26, %s2619_s26, %s2620_s28  }
  0x2a   : > { %p3099_p0 = scmp.ne.s32.totalorder %s3097_s9, 0 }
  0x2b   : > { %p3100_p2 = scmp.eq.s32.totalorder (!%p3099_p0), %s2683_s25, 0 }
  0x2c   : > { %258 = sbr.rel (%p3099_p0) target bundleno = 1868 (0x74c), region = 44 }
  0x33   : > { %2595 = dma.done.wait (%p3100_p2), [#allocation4], 2048   ;;  %p3101_p1 = pmov %p3100_p2 }
  0x34   : > { %s294_s13 = sand.u32 1, %s2608_s22   ;;  %p297_p5 = scmp.lt.s32.totalorder %s2683_s25, 0 }
  0x35   : > { %2597 = vsyncadd (%p3101_p1), [#allocation4], 4294965248  ;;  %s1708_s12 = sshll.u32 %s294_s13, 6  ;;  %p3102_p9 = scmp.ne.s32.totalorder %s2683_s25, 0 }
  0x36   : > { %s298_s14 = scalar_select %p297_p5, %s2683_s25, 0 }
  0x37   : > { %s2761_s26 = scalar_lea.vmem [#allocation6], %s1708_s12  ;;  %325 = sbr.rel (%p3102_p9) target bundleno = 62 (0x3e), region = 52  ;;  %v326_v0 = vld [vmem:[%s3088_s2] sm:$0xff] (!%p3102_p9) }
  0x38   : > { %s1709_s15 = sshll.u32 %s298_s14, 3  ;;  %327 = vst [vmem:[#allocation2] sm:$0xff] (!%p3102_p9), %v326_v0 }
  0x39   : > { %p300_p6 = scmp.lt.s32.totalorder %s1709_s15, 7 }
  0x3b   : > { %s3110_s15 = smov (!%p300_p6, %s1709_s15), 7 }
  0x3c   : > { %s1710_s9 = sshll.u32 %s3110_s15, 3 }
  0x3d   : > { %s2754_s17 = scalar_lea.vmem %s3086_s0, %s1710_s9  ;;  %s2759_s20 = scalar_lea.vmem %s3087_s1, %s1710_s9 }
  0x3e PF: > { %v2771_v1 = vld [vmem:[%s3089_s3] sm:$0xf]  ;;  %vm359_vm0 = vcmask 1043456   ;;  %v2621_v2 = vmov 0.0   ;;  %vm2622_vm1 = vmmov 0   ;;  %vm355_vm2 = vcmask 31744  }
  0x3f   : > { %1914 = vmatprep.subr.mxu0 %v2621_v2  ;;  %1916 = vmatprep.mubr.msk.f32.mxu0 %vm2622_vm1, %v2621_v2  ;;  %v348_v3 = vld [vmem:[%s2754_s17] sm:$0xff]  ;;  %v328_v4 = vld [vmem:[#allocation3] sm:$0xff]  ;;  %v329_v5 = vld [vmem:[#allocation3 + $0x8] sm:$0xff]  ;;  %v2623_v9 = vmov 0.0|0.0   ;;  %s3025_s9 = scalar_lea.sflag [#allocation5], %s294_s13  ;;  %p3103_p10 = scmp.ne.s32.totalorder %s3095_s7, 0 }
  0x40   : > { %1915 = vmatpush3.msk.msra.mxu0 %vm359_vm0, %v2771_v1  ;;  %v2779_v6 = vpack.c.bf16 %v329_v5, %v328_v4  ;;  %v330_v7 = vld [vmem:[#allocation3 + $0x10] sm:$0xff]  ;;  %v331_v8 = vld [vmem:[#allocation3 + $0x18] sm:$0xff]  ;;  %1954 = vmatprep.subr.mxu1 %v2621_v2  ;;  %v332_v11 = vld [vmem:[#allocation3 + $0x20] sm:$0xff]  ;;  %s1753_s11 = sshll.u32 (%p3103_p10), %s2683_s25, 3 }
  0x41   : > { %2234 = vmatprep.subr.bf16.mxu0 %v2623_v9  ;;  %1917 = vmatmul.mubr.msk.f32.vlgmr.msra.gmra.mrb[0].mxu0 %vm355_vm2, %v348_v3  ;;  %v2785_v10 = vpack.c.bf16 %v331_v8, %v330_v7  ;;  %v333_v12 = vld [vmem:[#allocation3 + $0x28] sm:$0xff]  ;;  %v2792_v13 = vld [vmem:[#allocation2] sm:$0xff]  ;;  %v1718_v14 = vld [vmem:[%s2754_s17 + $0x8] sm:$0xff]  ;;  %s1605_s16 = ssub.s32 (%p3103_p10), 9, %s1753_s11 }
  0x42   : > { %2236 = vmatpush3.bf16.msra.mxu0 %v2779_v6  ;;  %1951 = vmatprep.mubr.msk.f32.mxu0 %vm2622_vm1, %v2621_v2  ;;  %347 = vst [vmem:[%s2761_s26] sm:$0xff] %v2792_v13  ;;  %v2801_v15 = vpack.c.bf16 %v333_v12, %v332_v11  ;;  %v334_v16 = vld [vmem:[#allocation3 + $0x30] sm:$0xff]  ;;  %v335_v17 = vld [vmem:[#allocation3 + $0x38] sm:$0xff]  ;;  %v336_v19 = vld [vmem:[#allocation3 + $0x40] sm:$0xff]  ;;  %v436_v31 = vmax.f32 %v2792_v13, 0.0  ;;  %v507_v37 = vmul.f32 0.8, %v2792_v13 }
  0x43   : > { %2237 = vmatprep.subr.bf16.mxu0 %v2623_v9  ;;  %1955 = vmatpush3.msk.msra.mxu1 %vm359_vm0, %v2771_v1  ;;  %v2810_v18 = vpack.c.bf16 %v335_v17, %v334_v16  ;;  %v337_v20 = vld [vmem:[#allocation3 + $0x48] sm:$0xff]  ;;  %v338_v22 = vld [vmem:[#allocation3 + $0x50] sm:$0xff]  ;;  %v339_v23 = vld [vmem:[#allocation3 + $0x58] sm:$0xff]  ;;  %p1606_p11 = scmp.lt.s32.totalorder (%p3103_p10), %s1605_s16, 8 }
  0x44   : > { %1956 = vmatprep.mubr.msk.f32.mxu1 %vm2622_vm1, %v2621_v2  ;;  %2258 = vmatprep.subr.bf16.mxu1 %v2623_v9  ;;  %v2816_v21 = vpack.c.bf16 %v337_v20, %v336_v19  ;;  %v2822_v24 = vpack.c.bf16 %v339_v23, %v338_v22  ;;  %v340_v25 = vld [vmem:[#allocation3 + $0x60] sm:$0xff]  ;;  %v341_v26 = vld [vmem:[#allocation3 + $0x68] sm:$0xff]  ;;  %v342_v28 = vld [vmem:[#allocation3 + $0x70] sm:$0xff] }
  0x45   : > { %1957 = vmatmul.mubr.msk.f32.vlgmr.msra.gmra.mrb[0].mxu1 %vm355_vm2, %v1718_v14  ;;  %v2828_v27 = vpack.c.bf16 %v341_v26, %v340_v25  ;;  %v343_v29 = vld [vmem:[#allocation3 + $0x78] sm:$0xff]  ;;  %v1723_v32 = vld [vmem:[%s2754_s17 + $0x10] sm:$0xff]  ;;  %v1728_v43 = vld [vmem:[%s2754_s17 + $0x18] sm:$0xff] }
  0x46   : > { %2239 = vmatpush3.bf16.msra.mxu0 %v2785_v10  ;;  %2260 = vmatpush3.bf16.msra.mxu1 %v2779_v6  ;;  %v2834_v30 = vpack.c.bf16 %v343_v29, %v342_v28  ;;  %v433_v33 = vld [vmem:[%s2759_s20] sm:$0xff]  ;;  %v1721_v44 = vld [vmem:[%s2759_s20 + $0x8] sm:$0xff]  ;;  %v1726_v54 = vld [vmem:[%s2759_s20 + $0x10] sm:$0xff] }
  0x47   : > { %2240 = vmatprep.subr.bf16.mxu0 %v2623_v9  ;;  %2261 = vmatprep.subr.bf16.mxu1 %v2623_v9  ;;  %v434_v34 = vmul.f32 0.031622775, %v433_v33  ;;  %v2875_v35 = vld [vmem:[%s3091_s5] ss:$0 sm:$0xff]  ;;  %v589_v45 = vmul.f32 0.031622775, %v1721_v44 }
  0x48   : > { %1991 = vmatprep.mubr.msk.f32.mxu1 %vm2622_vm1, %v2621_v2  ;;  %v1733_v53 = vld [vmem:[%s2754_s17 + $0x20] sm:$0xff]  ;;  %v744_v55 = vmul.f32 0.031622775, %v1726_v54  ;;  %v1738_v63 = vld [vmem:[%s2754_s17 + $0x28] sm:$0xff]  ;;  %v1731_v0 = vld [vmem:[%s2759_s20 + $0x18] sm:$0xff] }
  0x49   : > { %v2426_v36 = vadd.f32 %v2875_v35, %v434_v34  ;;  %v2429_v46 = vadd.f32 %v2875_v35, %v589_v45  ;;  %v899_v3 = vmul.f32 0.031622775, %v1731_v0  ;;  %v1743_v14 = vld [vmem:[%s2754_s17 + $0x30] sm:$0xff]  ;;  %v1736_v16 = vld [vmem:[%s2759_s20 + $0x20] sm:$0xff]  ;;  %v1748_v29 = vld [vmem:[%s2754_s17 + $0x38] sm:$0xff] }
  0x4a   : > { %2242 = vmatpush3.bf16.msra.mxu0 %v2801_v15  ;;  %2263 = vmatpush3.bf16.msra.mxu1 %v2785_v10  ;;  %v2432_v56 = vadd.f32 %v2875_v35, %v744_v55  ;;  %v1054_v17 = vmul.f32 0.031622775, %v1736_v16 }
  0x4b   : > { %2243 = vmatprep.subr.bf16.mxu0 %v2623_v9  ;;  %2264 = vmatprep.subr.bf16.mxu1 %v2623_v9  ;;  %v2435_v4 = vadd.f32 %v2875_v35, %v899_v3 }
  0x4c   : > { %v2438_v19 = vadd.f32 %v2875_v35, %v1054_v17 }
  0x4e   : > { %2245 = vmatpush3.bf16.msra.mxu0 %v2810_v18  ;;  %2266 = vmatpush3.bf16.msra.mxu1 %v2801_v15 }
  0x4f   : > { %2246 = vmatprep.subr.bf16.mxu0 %v2623_v9  ;;  %2267 = vmatprep.subr.bf16.mxu1 %v2623_v9 }
  0x52   : > { %2248 = vmatpush3.bf16.msra.mxu0 %v2816_v21  ;;  %2269 = vmatpush3.bf16.msra.mxu1 %v2810_v18 }
  0x53   : > { %2249 = vmatprep.subr.bf16.mxu0 %v2623_v9  ;;  %2270 = vmatprep.subr.bf16.mxu1 %v2623_v9 }
  0x56   : > { %2251 = vmatpush3.bf16.msra.mxu0 %v2822_v24  ;;  %2272 = vmatpush3.bf16.msra.mxu1 %v2816_v21 }
  0x57   : > { %2252 = vmatprep.subr.bf16.mxu0 %v2623_v9  ;;  %2273 = vmatprep.subr.bf16.mxu1 %v2623_v9 }
  0x5a   : > { %2254 = vmatpush3.bf16.msra.mxu0 %v2828_v27  ;;  %2275 = vmatpush3.bf16.msra.mxu1 %v2822_v24 }
  0x5b   : > { %2255 = vmatprep.subr.bf16.mxu0 %v2623_v9  ;;  %2276 = vmatprep.subr.bf16.mxu1 %v2623_v9 }
  0x5e   : > { %2257 = vmatpush3.bf16.msra.mxu0 %v2834_v30  ;;  %2278 = vmatpush3.bf16.msra.mxu1 %v2828_v27 }
  0x5f   : > { %1994 = vmatprep.subr.mxu0 %v2621_v2  ;;  %2279 = vmatprep.subr.bf16.mxu1 %v2623_v9 }
  0x61   : > { %1952 = vmatmul.mubr.f32.vlgmr.msra.gmra.mrb[0].mxu0 %v436_v31 }
  0x62   : > { %1995 = vmatpush3.msk.msra.mxu0 %vm359_vm0, %v2771_v1  ;;  %1996 = vmatprep.mubr.msk.f32.mxu0 %vm2622_vm1, %v2621_v2 }
  0x63   : > { %2281 = vmatpush3.bf16.msra.mxu1 %v2834_v30  ;;  %2282 = vmatprep.subr.bf16.mxu0 %v2623_v9 }
  0x64   : > { %2034 = vmatprep.subr.mxu1 %v2621_v2 }
  0x65   : > { %1997 = vmatmul.mubr.msk.f32.vlgmr.msra.gmra.mrb[2].mxu0 %vm355_vm2, %v1723_v32  ;;  %v1746_v32 = vld [vmem:[%s2759_s20 + $0x30] sm:$0xff] }
  0x66   : > { %2284 = vmatpush3.bf16.msra.mxu0 %v2779_v6  ;;  %2031 = vmatprep.mubr.msk.f32.mxu0 %vm2622_vm1, %v2621_v2 }
  0x67   : > { %2285 = vmatprep.subr.bf16.mxu0 %v2623_v9 }
  0x6a   : > { %2287 = vmatpush3.bf16.msra.mxu0 %v2785_v10 }
  0x6b   : > { %2288 = vmatprep.subr.bf16.mxu0 %v2623_v9 }
  0x6e   : > { %2290 = vmatpush3.bf16.msra.mxu0 %v2801_v15 }
  0x6f   : > { %2291 = vmatprep.subr.bf16.mxu0 %v2623_v9 }
  0x72   : > { %2293 = vmatpush3.bf16.msra.mxu0 %v2810_v18 }
  0x73   : > { %2294 = vmatprep.subr.bf16.mxu0 %v2623_v9 }
  0x76   : > { %2296 = vmatpush3.bf16.msra.mxu0 %v2816_v21 }
  0x77   : > { %2297 = vmatprep.subr.bf16.mxu0 %v2623_v9 }
  0x7a   : > { %2299 = vmatpush3.bf16.msra.mxu0 %v2822_v24 }
  0x7b   : > { %2300 = vmatprep.subr.bf16.mxu0 %v2623_v9 }
  0x7e   : > { %2302 = vmatpush3.bf16.msra.mxu0 %v2828_v27 }
  0x7f   : > { %2303 = vmatprep.subr.bf16.mxu0 %v2623_v9 }
  0x82   : > { %2305 = vmatpush3.bf16.msra.mxu0 %v2834_v30 }
  0x83   : > { %2074 = vmatprep.subr.mxu0 %v2621_v2 }
 0x134   : > { %v503_v38 = vpop.f32.mrb[0].mxu0 }
 0x135   : > { %v2427_v39 = vadd.f32 %v2426_v36, %v503_v38  ;;  %v1953_v40 = vpop.f32.mrb[1].mxu0 }
 0x137   : > { %v2428_v41 = vadd.f32 %v2427_v39, %v507_v37  ;;  %v1751_v39 = vld [vmem:[%s2759_s20 + $0x38] sm:$0xff] }
 0x138   : > { %v1519_v40 = vmul.f32 0.031622775, %v1751_v39 }
 0x139   : > { %1717 = vst [vmem:[%s2761_s26 + $0x8] sm:$0xff] %v2428_v41  ;;  %v591_v42 = vmax.f32 %v2428_v41, 0.0  ;;  %v662_v48 = vmul.f32 0.8, %v2428_v41 }
 0x13a   : > { %v2447_v41 = vadd.f32 %v2875_v35, %v1519_v40 }
 0x13b   : > { %1992 = vmatmul.mubr.f32.vlgmr.msra.gmra.mrb[0].mxu1 %v591_v42 }
 0x13c   : > { %2035 = vmatpush3.msk.msra.mxu1 %vm359_vm0, %v2771_v1  ;;  %2036 = vmatprep.mubr.msk.f32.mxu1 %vm2622_vm1, %v2621_v2 }
 0x13d   : > { %2306 = vmatprep.subr.bf16.mxu1 %v2623_v9 }
 0x13f   : > { %2037 = vmatmul.mubr.msk.f32.vlgmr.msra.gmra.mrb[2].mxu1 %vm355_vm2, %v1728_v43 }
 0x140   : > { %2308 = vmatpush3.bf16.msra.mxu1 %v2779_v6  ;;  %2071 = vmatprep.mubr.msk.f32.mxu1 %vm2622_vm1, %v2621_v2 }
 0x141   : > { %2309 = vmatprep.subr.bf16.mxu1 %v2623_v9 }
 0x144   : > { %2311 = vmatpush3.bf16.msra.mxu1 %v2785_v10 }
 0x145   : > { %2312 = vmatprep.subr.bf16.mxu1 %v2623_v9 }
 0x148   : > { %2314 = vmatpush3.bf16.msra.mxu1 %v2801_v15 }
 0x149   : > { %2315 = vmatprep.subr.bf16.mxu1 %v2623_v9 }
 0x14c   : > { %2317 = vmatpush3.bf16.msra.mxu1 %v2810_v18 }
 0x14d   : > { %2318 = vmatprep.subr.bf16.mxu1 %v2623_v9 }
 0x150   : > { %2320 = vmatpush3.bf16.msra.mxu1 %v2816_v21 }
 0x151   : > { %2321 = vmatprep.subr.bf16.mxu1 %v2623_v9 }
 0x154   : > { %2323 = vmatpush3.bf16.msra.mxu1 %v2822_v24 }
 0x155   : > { %2324 = vmatprep.subr.bf16.mxu1 %v2623_v9 }
 0x158   : > { %2326 = vmatpush3.bf16.msra.mxu1 %v2828_v27 }
 0x159   : > { %2327 = vmatprep.subr.bf16.mxu1 %v2623_v9 }
 0x15c   : > { %2329 = vmatpush3.bf16.msra.mxu1 %v2834_v30 }
 0x15d   : > { %2114 = vmatprep.subr.mxu1 %v2621_v2 }
 0x20e   : > { %v658_v47 = vpop.f32.mrb[0].mxu1 }
 0x20f   : > { %v2430_v49 = vadd.f32 %v2429_v46, %v658_v47  ;;  %v1993_v50 = vpop.f32.mrb[1].mxu1 }
 0x211   : > { %v2431_v51 = vadd.f32 %v2430_v49, %v662_v48 }
 0x213   : > { %1722 = vst [vmem:[%s2761_s26 + $0x10] sm:$0xff] %v2431_v51  ;;  %v746_v52 = vmax.f32 %v2431_v51, 0.0  ;;  %v817_v58 = vmul.f32 0.8, %v2431_v51 }
 0x215   : > { %2032 = vmatmul.mubr.f32.vlgmr.msra.gmra.mrb[2].mxu0 %v746_v52 }
 0x216   : > { %2075 = vmatpush3.msk.msra.mxu0 %vm359_vm0, %v2771_v1  ;;  %2076 = vmatprep.mubr.msk.f32.mxu0 %vm2622_vm1, %v2621_v2 }
 0x217   : > { %2330 = vmatprep.subr.bf16.mxu0 %v2623_v9 }
 0x219   : > { %2077 = vmatmul.mubr.msk.f32.vlgmr.msra.gmra.mrb[4].mxu0 %vm355_vm2, %v1733_v53 }
 0x21a   : > { %2332 = vmatpush3.bf16.msra.mxu0 %v2779_v6  ;;  %2111 = vmatprep.mubr.msk.f32.mxu0 %vm2622_vm1, %v2621_v2 }
 0x21b   : > { %2333 = vmatprep.subr.bf16.mxu0 %v2623_v9 }
 0x21e   : > { %2335 = vmatpush3.bf16.msra.mxu0 %v2785_v10 }
 0x21f   : > { %2336 = vmatprep.subr.bf16.mxu0 %v2623_v9 }
 0x222   : > { %2338 = vmatpush3.bf16.msra.mxu0 %v2801_v15 }
 0x223   : > { %2339 = vmatprep.subr.bf16.mxu0 %v2623_v9 }
 0x226   : > { %2341 = vmatpush3.bf16.msra.mxu0 %v2810_v18 }
 0x227   : > { %2342 = vmatprep.subr.bf16.mxu0 %v2623_v9 }
 0x22a   : > { %2344 = vmatpush3.bf16.msra.mxu0 %v2816_v21 }
 0x22b   : > { %2345 = vmatprep.subr.bf16.mxu0 %v2623_v9 }
 0x22e   : > { %2347 = vmatpush3.bf16.msra.mxu0 %v2822_v24 }
 0x22f   : > { %2348 = vmatprep.subr.bf16.mxu0 %v2623_v9 }
 0x232   : > { %2350 = vmatpush3.bf16.msra.mxu0 %v2828_v27 }
 0x233   : > { %2351 = vmatprep.subr.bf16.mxu0 %v2623_v9 }
 0x236   : > { %2353 = vmatpush3.bf16.msra.mxu0 %v2834_v30 }
 0x237   : > { %2154 = vmatprep.subr.mxu0 %v2621_v2 }
 0x2e8   : > { %v813_v57 = vpop.f32.mrb[2].mxu0 }
 0x2e9   : > { %v2433_v59 = vadd.f32 %v2432_v56, %v813_v57  ;;  %v2033_v60 = vpop.f32.mrb[3].mxu0 }
 0x2eb   : > { %v2434_v61 = vadd.f32 %v2433_v59, %v817_v58 }
 0x2ed   : > { %1727 = vst [vmem:[%s2761_s26 + $0x18] sm:$0xff] %v2434_v61  ;;  %v901_v62 = vmax.f32 %v2434_v61, 0.0  ;;  %v972_v7 = vmul.f32 0.8, %v2434_v61 }
 0x2ef   : > { %2072 = vmatmul.mubr.f32.vlgmr.msra.gmra.mrb[2].mxu1 %v901_v62 }
 0x2f0   : > { %2115 = vmatpush3.msk.msra.mxu1 %vm359_vm0, %v2771_v1  ;;  %2116 = vmatprep.mubr.msk.f32.mxu1 %vm2622_vm1, %v2621_v2 }
 0x2f1   : > { %2354 = vmatprep.subr.bf16.mxu1 %v2623_v9 }
 0x2f3   : > { %2117 = vmatmul.mubr.msk.f32.vlgmr.msra.gmra.mrb[4].mxu1 %vm355_vm2, %v1738_v63 }
 0x2f4   : > { %2356 = vmatpush3.bf16.msra.mxu1 %v2779_v6  ;;  %2151 = vmatprep.mubr.msk.f32.mxu1 %vm2622_vm1, %v2621_v2 }
 0x2f5   : > { %2357 = vmatprep.subr.bf16.mxu1 %v2623_v9 }
 0x2f8   : > { %2359 = vmatpush3.bf16.msra.mxu1 %v2785_v10 }
 0x2f9   : > { %2360 = vmatprep.subr.bf16.mxu1 %v2623_v9 }
 0x2fc   : > { %2362 = vmatpush3.bf16.msra.mxu1 %v2801_v15 }
 0x2fd   : > { %2363 = vmatprep.subr.bf16.mxu1 %v2623_v9 }
 0x300   : > { %2365 = vmatpush3.bf16.msra.mxu1 %v2810_v18 }
 0x301   : > { %2366 = vmatprep.subr.bf16.mxu1 %v2623_v9 }
 0x304   : > { %2368 = vmatpush3.bf16.msra.mxu1 %v2816_v21 }
 0x305   : > { %2369 = vmatprep.subr.bf16.mxu1 %v2623_v9 }
 0x308   : > { %2371 = vmatpush3.bf16.msra.mxu1 %v2822_v24 }
 0x309   : > { %2372 = vmatprep.subr.bf16.mxu1 %v2623_v9 }
 0x30c   : > { %2374 = vmatpush3.bf16.msra.mxu1 %v2828_v27 }
 0x30d   : > { %2375 = vmatprep.subr.bf16.mxu1 %v2623_v9 }
 0x310   : > { %2377 = vmatpush3.bf16.msra.mxu1 %v2834_v30 }
 0x311   : > { %2194 = vmatprep.subr.mxu1 %v2621_v2 }
 0x3c2   : > { %v968_v5 = vpop.f32.mrb[2].mxu1 }
 0x3c3   : > { %v2436_v8 = vadd.f32 %v2435_v4, %v968_v5  ;;  %v2073_v11 = vpop.f32.mrb[3].mxu1 }
 0x3c5   : > { %v2437_v12 = vadd.f32 %v2436_v8, %v972_v7 }
 0x3c7   : > { %1732 = vst [vmem:[%s2761_s26 + $0x20] sm:$0xff] %v2437_v12  ;;  %v1056_v13 = vmax.f32 %v2437_v12, 0.0  ;;  %v1127_v22 = vmul.f32 0.8, %v2437_v12 }
 0x3c9   : > { %2112 = vmatmul.mubr.f32.vlgmr.msra.gmra.mrb[4].mxu0 %v1056_v13 }
 0x3ca   : > { %2155 = vmatpush3.msk.msra.mxu0 %vm359_vm0, %v2771_v1  ;;  %2156 = vmatprep.mubr.msk.f32.mxu0 %vm2622_vm1, %v2621_v2 }
 0x3cb   : > { %2378 = vmatprep.subr.bf16.mxu0 %v2623_v9 }
 0x3cd   : > { %2157 = vmatmul.mubr.msk.f32.vlgmr.msra.gmra.mrb[6].mxu0 %vm355_vm2, %v1743_v14 }
 0x3ce   : > { %2380 = vmatpush3.bf16.msra.mxu0 %v2779_v6  ;;  %2191 = vmatprep.mubr.msk.f32.mxu0 %vm2622_vm1, %v2621_v2 }
 0x3cf   : > { %2381 = vmatprep.subr.bf16.mxu0 %v2623_v9 }
 0x3d2   : > { %2383 = vmatpush3.bf16.msra.mxu0 %v2785_v10 }
 0x3d3   : > { %2384 = vmatprep.subr.bf16.mxu0 %v2623_v9 }
 0x3d6   : > { %2386 = vmatpush3.bf16.msra.mxu0 %v2801_v15 }
 0x3d7   : > { %2387 = vmatprep.subr.bf16.mxu0 %v2623_v9 }
 0x3da   : > { %2389 = vmatpush3.bf16.msra.mxu0 %v2810_v18 }
 0x3db   : > { %2390 = vmatprep.subr.bf16.mxu0 %v2623_v9 }
 0x3de   : > { %2392 = vmatpush3.bf16.msra.mxu0 %v2816_v21 }
 0x3df   : > { %2393 = vmatprep.subr.bf16.mxu0 %v2623_v9 }
 0x3e2   : > { %2395 = vmatpush3.bf16.msra.mxu0 %v2822_v24 }
 0x3e3   : > { %2396 = vmatprep.subr.bf16.mxu0 %v2623_v9 }
 0x3e6   : > { %2398 = vmatpush3.bf16.msra.mxu0 %v2828_v27 }
 0x3e7   : > { %2399 = vmatprep.subr.bf16.mxu0 %v2623_v9 }
 0x3ea   : > { %2401 = vmatpush3.bf16.msra.mxu0 %v2834_v30 }
 0x49c   : > { %v1123_v20 = vpop.f32.mrb[4].mxu0 }
 0x49d   : > { %v2439_v23 = vadd.f32 %v2438_v19, %v1123_v20  ;;  %v2113_v25 = vpop.f32.mrb[5].mxu0 }
 0x49f   : > { %v2440_v26 = vadd.f32 %v2439_v23, %v1127_v22 }
 0x4a1   : > { %1737 = vst [vmem:[%s2761_s26 + $0x28] sm:$0xff] %v2440_v26  ;;  %v1211_v28 = vmax.f32 %v2440_v26, 0.0 }
 0x4a3   : > { %2152 = vmatmul.mubr.f32.vlgmr.msra.gmra.mrb[4].mxu1 %v1211_v28 }
 0x4a4   : > { %2195 = vmatpush3.msk.msra.mxu1 %vm359_vm0, %v2771_v1  ;;  %2196 = vmatprep.mubr.msk.f32.mxu1 %vm2622_vm1, %v2621_v2  ;;  %v1741_v1 = vld [vmem:[%s2759_s20 + $0x28] sm:$0xff] }
 0x4a5   : > { %2402 = vmatprep.subr.bf16.mxu1 %v2623_v9 }
 0x4a7   : > { %2197 = vmatmul.mubr.msk.f32.vlgmr.msra.gmra.mrb[6].mxu1 %vm355_vm2, %v1748_v29 }
 0x4a8   : > { %2404 = vmatpush3.bf16.msra.mxu1 %v2779_v6  ;;  %2231 = vmatprep.mubr.msk.f32.mxu1 %vm2622_vm1, %v2621_v2  ;;  %v1209_v2 = vmul.f32 0.031622775, %v1741_v1 }
 0x4a9   : > { %2405 = vmatprep.subr.bf16.mxu1 %v2623_v9 }
 0x4aa   : > { %v2441_v6 = vadd.f32 %v2875_v35, %v1209_v2 }
 0x4ac   : > { %2407 = vmatpush3.bf16.msra.mxu1 %v2785_v10 }
 0x4ad   : > { %2408 = vmatprep.subr.bf16.mxu1 %v2623_v9 }
 0x4b0   : > { %2410 = vmatpush3.bf16.msra.mxu1 %v2801_v15  ;;  %v1282_v15 = vmul.f32 0.8, %v2440_v26 }
 0x4b1   : > { %2411 = vmatprep.subr.bf16.mxu1 %v2623_v9 }
 0x4b4   : > { %2413 = vmatpush3.bf16.msra.mxu1 %v2810_v18 }
 0x4b5   : > { %2414 = vmatprep.subr.bf16.mxu1 %v2623_v9 }
 0x4b8   : > { %2416 = vmatpush3.bf16.msra.mxu1 %v2816_v21 }
 0x4b9   : > { %2417 = vmatprep.subr.bf16.mxu1 %v2623_v9 }
 0x4bc   : > { %2419 = vmatpush3.bf16.msra.mxu1 %v2822_v24 }
 0x4bd   : > { %2420 = vmatprep.subr.bf16.mxu1 %v2623_v9 }
 0x4c0   : > { %2422 = vmatpush3.bf16.msra.mxu1 %v2828_v27  ;;  %v1364_v27 = vmul.f32 0.031622775, %v1746_v32 }
 0x4c1   : > { %2423 = vmatprep.subr.bf16.mxu1 %v2623_v9 }
 0x4c2   : > { %v2444_v9 = vadd.f32 %v2875_v35, %v1364_v27 }
 0x4c4   : > { %2425 = vmatpush3.bf16.msra.mxu1 %v2834_v30 }
 0x576   : > { %v1278_v10 = vpop.f32.mrb[4].mxu1 }
 0x577   : > { %v2442_v18 = vadd.f32 %v2441_v6, %v1278_v10  ;;  %v2153_v21 = vpop.f32.mrb[5].mxu1 }
 0x579   : > { %v2443_v24 = vadd.f32 %v2442_v18, %v1282_v15 }
 0x57b   : > { %1742 = vst [vmem:[%s2761_s26 + $0x30] sm:$0xff] %v2443_v24  ;;  %v1366_v31 = vmax.f32 %v2443_v24, 0.0  ;;  %v1437_v30 = vmul.f32 0.8, %v2443_v24 }
 0x57d   : > { %2192 = vmatmul.mubr.f32.vlgmr.msra.gmra.mrb[6].mxu0 %v1366_v31 }
 0x650   : > { %v1433_v33 = vpop.f32.mrb[6].mxu0 }
 0x651   : > { %v2445_v34 = vadd.f32 %v2444_v9, %v1433_v33  ;;  %v2193_v36 = vpop.f32.mrb[7].mxu0 }
 0x653   : > { %v2446_v37 = vadd.f32 %v2445_v34, %v1437_v30 }
 0x655   : > { %1747 = vst [vmem:[%s2761_s26 + $0x38] sm:$0xff] %v2446_v37  ;;  %v1521_v38 = vmax.f32 %v2446_v37, 0.0  ;;  %v1592_v43 = vmul.f32 0.8, %v2446_v37 }
 0x657   : > { %2232 = vmatmul.mubr.f32.vlgmr.msra.gmra.mrb[6].mxu1 %v1521_v38 }
 0x729   : > { %1603 = sbr.rel (!%p3103_p10) target bundleno = 1868 (0x74c), region = 56 }
 0x72a   : > { %v1588_v42 = vpop.f32.mrb[6].mxu1 }
 0x72b   : > { %v2448_v44 = vadd.f32 %v2447_v41, %v1588_v42  ;;  %v2233_v45 = vpop.f32.mrb[7].mxu1 }
 0x72d   : > { %v2449_v46 = vadd.f32 %v2448_v44, %v1592_v43 }
 0x72f   : > { %1595 = vst [vmem:[#allocation2] sm:$0xff] %v2449_v46 }
 0x730   : > { %s3112_s16 = smov (!%p1606_p11, %s1605_s16), 8 }
 0x731   : > { %s3030_s17 = sshll.u32 %s3112_s16, 7 }
 0x732   : > { %s1610_s18 = ssub.s32 1024, %s3030_s17 }
 0x733   : > { %1611 = vsyncadd %s3025_s9, %s1610_s18  ;;  %p1755_p13 = scmp.ne.s32.totalorder %s3030_s17, 0  ;;  %s1761_s13 = sshll.u32 %s2683_s25, 10 }
 0x734   : > { %s3039_s20 = scalar_lea.hbm %s3092_s6, %s1761_s13  ;;  %s1616_s28 = sshll.u32 %s2761_s26, 4  ;;  %s3042_s28 = int_to_ptr.vmem [resolvable:$true] %s1616_s28 }
 0x735   : > { %s2550_s29 = scalar_lea.vmem %s3042_s28, %s3030_s17  ;;  %s2624_s10 = smov [#allocation6]  }
 0x736   : > { %p2551_p3 = scmp.ne.s32.totalorder %s3042_s28, %s2550_s29  ;;  %s2554_s14 = sshll.u32 %s2624_s10, 4  ;;  %s2555_s14 = int_to_ptr.vmem [resolvable:$false] %s2554_s14 }
 0x737   : > { %s2556_s25 = scalar_lea.vmem %s2555_s14, 2048  ;;  %p2557_p8 = scmp.lt.s32.totalorder %s3042_s28, %s2555_s14 }
 0x738   : > { %p2552_p4 = pnand %p2551_p3, %p1755_p13  ;;  %p2558_p12 = scmp.lt.s32.totalorder %s2556_s25, %s2550_s29 }
 0x73a   : > { %p2553_p7 = pneg %p2552_p4  ;;  %p2559_p0 = por %p2558_p12, %p2557_p8 }
 0x73c   : > { %p2560_p2 = pnand %p2559_p0, %p2553_p7 }
 0x73e   : > { %2563 = shalt.err (!%p2560_p2)
}
 0x73f   : > { %s2564_s26 = scalar_lea.hbm %s3039_s20, %s3030_s17  ;;  %s2568_s11 = scalar_lea.hbm %s3092_s6, 1152 }
 0x740   : > { %p2565_p1 = scmp.ne.s32.totalorder %s3039_s20, %s2564_s26  ;;  %p2569_p9 = scmp.lt.u32.totalorder %s3039_s20, %s3092_s6 }
 0x741   : > { %p2570_p10 = scmp.lt.u32.totalorder %s2568_s11, %s2564_s26  ;;  %p2572_p3 = scmp.lt.u32.totalorder %s2564_s26, %s3039_s20 }
 0x742   : > { %p2566_p5 = pnand %p2565_p1, %p1755_p13 }
 0x743   : > { %p2571_p11 = por %p2570_p10, %p2569_p9 }
 0x744   : > { %p2567_p6 = pneg %p2566_p5 }
 0x745   : > { %p2573_p4 = por %p2572_p3, %p2571_p11 }
 0x747   : > { %p2574_p7 = pnand %p2573_p4, %p2567_p6 }
 0x749   : > { %2577 = shalt.err (!%p2574_p7)
}
 0x74a   : > { %s2625_s13 = smov 128   ;;  %s2626_s7 = smov 8  }
 0x74b   : > { %1622 = dma.vmem_to_hbm [thread:$0]  (%p1755_p13), %s3042_s28, %s3030_s17, %s3039_s20, %s3025_s9, %s2625_s13, %s2625_s13, %s2626_s7  }
 0x74c PF: > { %p2481_p8 = scmp.ge.s32.totalorder %s2616_s24, 2  ;;  %s1631_s19 = sand.u32 1, %s2604_s21  }
 0x74d   : > { %p3104_p12 = scmp.ne.s32.totalorder %s3096_s8, 0  ;;  %s1632_s29 = scalar_lea.sflag [#allocation5], %s1631_s19 }
 0x74f   : > { %p2476_p0 = pnand %p2481_p8, %p3104_p12 }
 0x751   : > { %2599 = dma.done.wait (!%p2476_p0), %s1632_s29, 1024  }
 0x752   : > { %2601 = vsyncadd (!%p2476_p0), %s1632_s29, 4294966272  ;;  %p17_p2 = scmp.ge.s32.totalorder %s2687_s27, 4   ;;  %s3105_s21 = smov %s2608_s22 }
 0x753   : > { %s3106_s22 = smov %s2612_s23  ;;  %s3107_s23 = smov %s2698_s30 }
 0x754   : > { %s3108_s24 = smov %s2687_s27  ;;  %19 = sbr.rel (!%p17_p2) target bundleno = 4 (0x4), region = 112 }
 0x75b   :  { %1637 = vsyncpa [#allocation4], 1 }
 0x75c   :  { %1639 = vsyncpa [#allocation4 + $0x1], 1 }
 0x75d   :  { %1640 = vsyncpa [#allocation5], 1 }
 0x75e   :  { %1642 = vsyncpa [#allocation5 + $0x1], 1 }

</bundles_post_ra>
